<compile_context>
chip_gen: v7x
topology: tpu7x:2x2x1
jax: 0.10.0
libtpu: 0.0.40
codegen_flags: <defaults>
</compile_context>

<pallas_src>
import functools

import jax
import jax.numpy as jnp
from jax import lax
from jax.experimental import pallas as pl
from jax.experimental.pallas import tpu as pltpu


def _focal_kernel(pred_ref, true_ref, out_ref, *, gamma, alpha, n_inner,
                  n_valid_blocks, grid_blocks, tile_rows, lanes,
                  last_block_rows):
    if n_inner is None:                      # 1-D grid (single-TensorCore chips)
        blk = pl.program_id(0)
        is_first = blk == 0
    else:                                    # 2-D grid (v7x megacore split)
        j = pl.program_id(1)
        blk = pl.program_id(0) * n_inner + j
        is_first = j == 0

    @pl.when(is_first)
    def _():
        out_ref[...] = jnp.zeros_like(out_ref)

    x = pred_ref[...].astype(jnp.float32)
    t = true_ref[...].astype(jnp.float32)

    # Shared transcendental: e = exp(-|x|) feeds both the BCE term and sigmoid.
    e = jnp.exp(-jnp.abs(x))

    # BCEWithLogitsLoss(reduction='none'), numerically stable form.
    bce = jnp.maximum(x, 0.0) - x * t + jnp.log1p(e)

    # sigmoid(x) from e: approx reciprocal (EUP slot) + one Newton step.
    denom = 1.0 + e
    r = pl.reciprocal(denom, approx=True)
    r = r * (2.0 - denom * r)
    p = jnp.where(x >= 0.0, 1.0, e) * r

    # d = 1 - p_t = p + t - 2*p*t, computed directly (no p_t intermediate).
    pt = p * t
    d = (p - pt) + (t - pt)
    # alpha_factor = t*alpha + (1-t)*(1-alpha) = (1-alpha) + t*(2*alpha - 1).
    alpha_factor = (1.0 - alpha) + t * (2.0 * alpha - 1.0)

    g = float(gamma)
    if g == 1.5:
        mod = d * jnp.sqrt(d)                # d**1.5 without exp/log; exact at d == 0
    elif g == 2.0:
        mod = d * d
    elif g == 1.0:
        mod = d
    elif g == 0.0:
        mod = jnp.ones_like(d)
    else:
        # general-gamma path: guard log(0) (padded / saturated elements have d == 0).
        mod = jnp.where(d > 0.0,
                        jnp.exp(g * jnp.log(jnp.maximum(d, 1e-38))), 0.0)

    loss = bce * (alpha_factor * mod)

    def accumulate(v):
        # Vreg-shaped accumulation: fold the row tile onto an (8, 128) partial; the
        # single cross-lane/sublane reduction happens once, outside the kernel.
        out_ref[...] += v.reshape(tile_rows // 8, 8, lanes).sum(axis=0)[None]

    full_last = last_block_rows == tile_rows
    last_idx = n_valid_blocks - 1

    if full_last and grid_blocks == n_valid_blocks:
        # Every grid step is a full, valid block: no masking, no branching.
        accumulate(loss)
    else:
        @pl.when(blk < last_idx)
        def _():
            accumulate(loss)

        @pl.when(blk == last_idx)
        def _():
            if full_last:
                accumulate(loss)
            else:
                # Row mask for the overhanging tail of the LAST block only; rows past
                # `rows` hold unspecified data and are zeroed here.
                row = lax.broadcasted_iota(jnp.int32, (tile_rows, lanes), 0)
                accumulate(jnp.where(row < last_block_rows, loss, 0.0))
        # blk > last_idx (padded tail step of the 2-TC grid on odd block counts):
        # its index_map is clamped to the last valid block and nothing is accumulated.


def _num_tensorcores_per_chip():
    # v7x has 2 TensorCores per chip; v5e/v6e have 1.  Best-effort detection.
    try:
        kind = jax.devices()[0].device_kind.lower()
    except Exception:
        return 1
    return 2 if "7" in kind else 1


def focal_loss(pred, true, *, gamma=1.5, alpha=0.25, reduction="mean",
               max_tile_rows=8192, lanes=128):
    """FocalLoss(nn.BCEWithLogitsLoss()) forward. Returns a scalar ('mean'/'sum')."""
    assert pred.shape == true.shape
    n = int(pred.size)

    if reduction not in ("mean", "sum"):
        # TODO(synk): reduction='none' needs the full per-element loss map output;
        # only the reduced 'mean'/'sum' paths are implemented in-kernel.
        raise NotImplementedError("only 'mean' / 'sum' reductions supported")

    # Flatten to a lane-dense [rows, 128] slab. Pad ONLY up to the next multiple of
    # 128 (and at least 8 rows) with NEUTRAL values (pred=-1e4, true=0), which produce
    # exactly zero loss, so no per-element validity mask is needed in the kernel.
    rows = max(-(-n // lanes), 8)
    padded = rows * lanes

    pf = pred.reshape(-1)
    tf = true.reshape(-1)
    if padded != n:
        pf = jnp.pad(pf, (0, padded - n), constant_values=-10000.0)
        tf = jnp.pad(tf, (0, padded - n))
    # Keep the caller's dtype in HBM (bf16 stays bf16); cast to f32 in-kernel.
    p2 = pf.reshape(rows, lanes)
    t2 = tf.reshape(rows, lanes)

    # Tile: multiple of 8 rows, never larger than the array (last block may overhang
    # by < tile_rows rows and is row-masked in-kernel on that block only).
    tile_rows = min(int(max_tile_rows), (rows // 8) * 8)
    n_valid_blocks = -(-rows // tile_rows)
    last_block_rows = rows - (n_valid_blocks - 1) * tile_rows

    # Grid: 1-D on single-TC chips; 2-way "parallel" outer split only on 2-TC chips.
    if _num_tensorcores_per_chip() >= 2 and n_valid_blocks >= 2:
        n_outer, n_inner = 2, -(-n_valid_blocks // 2)
        grid = (n_outer, n_inner)
        dims = ("parallel", "arbitrary")
        grid_blocks = n_outer * n_inner
        last_blk = n_valid_blocks - 1
        in_map = lambda i, j: (jnp.minimum(i * n_inner + j, last_blk), 0)
        out_map = lambda i, j: (i, 0, 0)
    else:
        n_outer, n_inner = 1, None
        grid = (n_valid_blocks,)
        dims = ("arbitrary",)
        grid_blocks = n_valid_blocks
        in_map = lambda b: (b, 0)
        out_map = lambda b: (0, 0, 0)

    kernel = functools.partial(
        _focal_kernel, gamma=float(gamma), alpha=float(alpha), n_inner=n_inner,
        n_valid_blocks=n_valid_blocks, grid_blocks=grid_blocks,
        tile_rows=tile_rows, lanes=lanes, last_block_rows=last_block_rows)

    partials = pl.pallas_call(
        kernel,
        out_shape=jax.ShapeDtypeStruct((n_outer, 8, lanes), jnp.float32),
        grid_spec=pltpu.PrefetchScalarGridSpec(
            num_scalar_prefetch=0,
            grid=grid,
            in_specs=[
                pl.BlockSpec((tile_rows, lanes), in_map),
                pl.BlockSpec((tile_rows, lanes), in_map),
            ],
            out_specs=pl.BlockSpec((1, 8, lanes), out_map),
        ),
        compiler_params=pltpu.CompilerParams(
            dimension_semantics=dims,
            # 2 inputs x 2 pipeline buffers x (8192 x 128 x 4 B) = 16 MiB at the
            # f32 defaults; 40 MiB leaves headroom inside v7x's 64 MiB VMEM.
            vmem_limit_bytes=40 * 1024 * 1024,
        ),
    )(p2, t2)

    total = jnp.sum(partials)
    if reduction == "mean":
        return total / n
    return total


def _focal_ref(pred, true, gamma=1.5, alpha=0.25):
    # Pure-JAX reference of the PyTorch FocalLoss forward (BCEWithLogitsLoss, mean).
    x, t = pred.astype(jnp.float32), true.astype(jnp.float32)
    bce = jnp.maximum(x, 0.0) - x * t + jnp.log1p(jnp.exp(-jnp.abs(x)))
    p = jax.nn.sigmoid(x)
    p_t = t * p + (1.0 - t) * (1.0 - p)
    alpha_factor = t * alpha + (1.0 - t) * (1.0 - alpha)
    loss = bce * alpha_factor * (1.0 - p_t) ** gamma
    return loss.mean()


if __name__ == "__main__":
    key = jax.random.PRNGKey(0)
    k1, k2 = jax.random.split(key)
    # NCHW prediction logits and soft targets in [0, 1] (2*4*16*16 = 2048 elems).
    pred = jax.random.normal(k1, (2, 4, 16, 16), dtype=jnp.float32) * 2.0
    true = jax.random.uniform(k2, (2, 4, 16, 16), dtype=jnp.float32)

    out = focal_loss(pred, true, gamma=1.5, alpha=0.25, reduction="mean")
    out = jax.block_until_ready(out)
    ref = _focal_ref(pred, true)
    assert jnp.allclose(out, ref, rtol=1e-4, atol=1e-6), (out, ref)

    # Also exercise the neutral-padded path (element count not a multiple of 128).
    k3, k4 = jax.random.split(k2)
    pred2 = jax.random.normal(k3, (2, 3, 5, 7), dtype=jnp.float32) * 2.0
    true2 = jax.random.uniform(k4, (2, 3, 5, 7), dtype=jnp.float32)
    out2 = jax.block_until_ready(focal_loss(pred2, true2, reduction="sum"))
    ref2 = _focal_ref(pred2, true2) * pred2.size
    assert jnp.allclose(out2, ref2, rtol=1e-4, atol=1e-5), (out2, ref2)

    print("KERNEL_OK")
</pallas_src>

<mosaic_0001>
module attributes {stable_mosaic.version = 11 : i64} {
  func.func @_focal_kernel(%arg0: i32, %arg1: memref<16x128xf32, #tpu.memory_space<vmem>>, %arg2: memref<16x128xf32, #tpu.memory_space<vmem>>, %arg3: memref<1x8x128xf32, #tpu.memory_space<vmem>>) attributes {dimension_semantics = [#tpu.dimension_semantics<arbitrary>], iteration_bounds = array<i64: 1>, scalar_prefetch = 0 : i64, scratch_operands = 0 : i64, tpu.core_type = #tpu.core_type<tc>, window_params = [{transform_indices = @transform_0, window_bounds = array<i64: 16, 128>}, {transform_indices = @transform_1, window_bounds = array<i64: 16, 128>}, {pipeline_mode = #tpu.pipeline_mode<synchronous>, transform_indices = @transform_2, window_bounds = array<i64: 1, 8, 128>}]} {
    %c0_i32 = arith.constant 0 : i32
    %0 = arith.cmpi eq, %arg0, %c0_i32 : i32
    %1 = arith.extui %0 : i1 to i32
    %c0_i32_0 = arith.constant 0 : i32
    %2 = arith.cmpi ne, %1, %c0_i32_0 : i32
    scf.if %2 {
      %cst_18 = arith.constant 0.000000e+00 : f32
      %45 = vector.broadcast %cst_18 : f32 to vector<1x8x128xf32>
      %c0_19 = arith.constant 0 : index
      %c0_20 = arith.constant 0 : index
      %c0_21 = arith.constant 0 : index
      %46 = vector.load %arg3[%c0_19, %c0_20, %c0_21] : memref<1x8x128xf32, #tpu.memory_space<vmem>>, vector<1x8x128xf32>
      tpu.vector_store %arg3[%c0_19, %c0_20, %c0_21], %45 {strides = array<i32>} : memref<1x8x128xf32, #tpu.memory_space<vmem>>, vector<1x8x128xf32>,
    } else {
    }
    %c0 = arith.constant 0 : index
    %c0_1 = arith.constant 0 : index
    %3 = vector.load %arg1[%c0, %c0_1] : memref<16x128xf32, #tpu.memory_space<vmem>>, vector<16x128xf32>
    %c0_2 = arith.constant 0 : index
    %c0_3 = arith.constant 0 : index
    %4 = vector.load %arg2[%c0_2, %c0_3] : memref<16x128xf32, #tpu.memory_space<vmem>>, vector<16x128xf32>
    %5 = math.absf %3 : vector<16x128xf32>
    %cst = arith.constant 0.000000e+00 : f32
    %6 = vector.broadcast %cst : f32 to vector<16x128xf32>
    %7 = arith.subf %6, %5 : vector<16x128xf32>
    %8 = math.exp %7 : vector<16x128xf32>
    %cst_4 = arith.constant 0.000000e+00 : f32
    %9 = vector.broadcast %cst_4 : f32 to vector<16x128xf32>
    %10 = arith.maximumf %3, %9 : vector<16x128xf32>
    %11 = arith.mulf %3, %4 : vector<16x128xf32>
    %12 = arith.subf %10, %11 : vector<16x128xf32>
    %13 = math.log1p %8 : vector<16x128xf32>
    %14 = arith.addf %12, %13 : vector<16x128xf32>
    %cst_5 = arith.constant 1.000000e+00 : f32
    %15 = vector.broadcast %cst_5 : f32 to vector<16x128xf32>
    %16 = arith.addf %15, %8 : vector<16x128xf32>
    %17 = tpu.reciprocal %16 {approx = true} : vector<16x128xf32> -> vector<16x128xf32>
    %18 = arith.mulf %16, %17 : vector<16x128xf32>
    %cst_6 = arith.constant 2.000000e+00 : f32
    %19 = vector.broadcast %cst_6 : f32 to vector<16x128xf32>
    %20 = arith.subf %19, %18 : vector<16x128xf32>
    %21 = arith.mulf %17, %20 : vector<16x128xf32>
    %cst_7 = arith.constant 0.000000e+00 : f32
    %22 = vector.broadcast %cst_7 : f32 to vector<16x128xf32>
    %23 = arith.cmpf oge, %3, %22 : vector<16x128xf32>
    %cst_8 = arith.constant 1.000000e+00 : f32
    %24 = vector.broadcast %cst_8 : f32 to vector<16x128xf32>
    %25 = arith.select %23, %24, %8 : vector<16x128xi1>, vector<16x128xf32>
    %26 = arith.mulf %25, %21 : vector<16x128xf32>
    %27 = arith.mulf %26, %4 : vector<16x128xf32>
    %28 = arith.subf %26, %27 : vector<16x128xf32>
    %29 = arith.subf %4, %27 : vector<16x128xf32>
    %30 = arith.addf %28, %29 : vector<16x128xf32>
    %cst_9 = arith.constant -5.000000e-01 : f32
    %31 = vector.broadcast %cst_9 : f32 to vector<16x128xf32>
    %32 = arith.mulf %4, %31 : vector<16x128xf32>
    %cst_10 = arith.constant 7.500000e-01 : f32
    %33 = vector.broadcast %cst_10 : f32 to vector<16x128xf32>
    %34 = arith.addf %33, %32 : vector<16x128xf32>
    %35 = math.sqrt %30 : vector<16x128xf32>
    %36 = arith.mulf %30, %35 : vector<16x128xf32>
    %37 = arith.mulf %34, %36 : vector<16x128xf32>
    %38 = arith.mulf %14, %37 : vector<16x128xf32>
    %c0_11 = arith.constant 0 : index
    %c0_12 = arith.constant 0 : index
    %c0_13 = arith.constant 0 : index
    %39 = vector.load %arg3[%c0_11, %c0_12, %c0_13] : memref<1x8x128xf32, #tpu.memory_space<vmem>>, vector<1x8x128xf32>
    %40 = vector.shape_cast %38 : vector<16x128xf32> to vector<2x8x128xf32>
    %cst_14 = arith.constant dense<0.000000e+00> : vector<8x128xf32>
    %41 = vector.multi_reduction <add>, %40, %cst_14 [0] : vector<2x8x128xf32> to vector<8x128xf32>
    %42 = vector.shape_cast %41 : vector<8x128xf32> to vector<1x8x128xf32>
    %43 = arith.addf %39, %42 : vector<1x8x128xf32>
    %c0_15 = arith.constant 0 : index
    %c0_16 = arith.constant 0 : index
    %c0_17 = arith.constant 0 : index
    %44 = vector.load %arg3[%c0_15, %c0_16, %c0_17] : memref<1x8x128xf32, #tpu.memory_space<vmem>>, vector<1x8x128xf32>
    tpu.vector_store %arg3[%c0_15, %c0_16, %c0_17], %43 {strides = array<i32>} : memref<1x8x128xf32, #tpu.memory_space<vmem>>, vector<1x8x128xf32>,
    return
  }
  func.func @transform_0(%arg0: i32) -> (i32, i32) {
    %c0_i32 = arith.constant 0 : i32
    %c0_i32_0 = arith.constant 0 : i32
    return %arg0, %c0_i32 : i32, i32
  }
  func.func @transform_1(%arg0: i32) -> (i32, i32) {
    %c0_i32 = arith.constant 0 : i32
    %c0_i32_0 = arith.constant 0 : i32
    return %arg0, %c0_i32 : i32, i32
  }
  func.func @transform_2(%arg0: i32) -> (i32, i32, i32) {
    %c0_i32 = arith.constant 0 : i32
    %c0_i32_0 = arith.constant 0 : i32
    %c0_i32_1 = arith.constant 0 : i32
    %c0_i32_2 = arith.constant 0 : i32
    return %c0_i32, %c0_i32_0, %c0_i32_1 : i32, i32, i32
  }
}

</mosaic_0001>

<bundles_post_ra>
// kernel: tpu_custom_call.1
= control target key start
LH: loop header
LB: loop body
LE: loop exit
PB: predicated region body
PF: predicated region fallthrough
CT: control target
= control target key end

     0   :  { %7 = vsyncpa [#allocation3], 0  ;;  %s319_s0 = inlined_call_operand.hbm [shape: f32[16,128], index: 0, kind: input, shape index: {}]   ;;  %s320_s1 = inlined_call_operand.hbm [shape: f32[16,128], index: 1, kind: input, shape index: {}]   ;;  %s321_s2 = inlined_call_operand.hbm [shape: f32[1,8,128], index: 2, kind: output, shape index: {}]  }
   0x1   :  { %8 = vsyncpa [#allocation6], 0 }
   0x2   :  { %9 = vsyncpa [#allocation4], 0  ;;  %s245_s9 = smov [#allocation2]   ;;  %s173_s13 = scalar_lea.hbm %s319_s0, 256 }
   0x3   :  { %s15_s10 = sshll.u32 %s245_s9, 4  ;;  %p174_p0 = scmp.ne.s32.totalorder %s319_s0, %s173_s13  ;;  %s16_s10 = int_to_ptr.vmem [resolvable:$true] %s15_s10 }
   0x4   :  { %p177_p1 = scmp.lt.u32.totalorder %s173_s13, %s319_s0 }
   0x6   :  { %p179_p2 = pnand %p177_p1, %p174_p0 }
   0x8   :  { %182 = shalt.err (!%p179_p2)
}
   0x9   :  { %s183_s18 = scalar_lea.vmem %s16_s10, 256  ;;  %p188_p4 = scmp.lt.s32.totalorder %s16_s10, %s16_s10 }
   0xa   :  { %p184_p3 = scmp.ne.s32.totalorder %s16_s10, %s183_s18  ;;  %p189_p5 = scmp.lt.s32.totalorder %s183_s18, %s183_s18 }
   0xc   :  { %p190_p6 = por %p189_p5, %p188_p4 }
   0xe   :  { %p191_p7 = pnand %p190_p6, %p184_p3 }
  0x10   :  { %194 = shalt.err (!%p191_p7)
}
  0x11   :  { %s246_s19 = smov 128   ;;  %s247_s20 = smov 8  }
  0x12   :  { %21 = dma.hbm_to_vmem [thread:$0]  %s319_s0, 256, %s16_s10, [#allocation3], %s246_s19, %s246_s19, %s247_s20  }
  0x13   :  { %s248_s23 = smov [#allocation5]   ;;  %s195_s27 = scalar_lea.hbm %s320_s1, 256 }
  0x14   :  { %s27_s24 = sshll.u32 %s248_s23, 4  ;;  %p196_p8 = scmp.ne.s32.totalorder %s320_s1, %s195_s27  ;;  %s28_s24 = int_to_ptr.vmem [resolvable:$true] %s27_s24 }
  0x15   :  { %p199_p9 = scmp.lt.u32.totalorder %s195_s27, %s320_s1 }
  0x17   :  { %p201_p10 = pnand %p199_p9, %p196_p8 }
  0x19   :  { %204 = shalt.err (!%p201_p10)
}
  0x1a   :  { %s205_s4 = scalar_lea.vmem %s28_s24, 256  ;;  %p210_p12 = scmp.lt.s32.totalorder %s28_s24, %s28_s24 }
  0x1b   :  { %p206_p11 = scmp.ne.s32.totalorder %s28_s24, %s205_s4  ;;  %p211_p13 = scmp.lt.s32.totalorder %s205_s4, %s205_s4 }
  0x1d   :  { %p212_p0 = por %p211_p13, %p210_p12 }
  0x1f   :  { %p213_p1 = pnand %p212_p0, %p206_p11 }
  0x21   :  { %216 = shalt.err (!%p213_p1)
}
  0x22   :  { %33 = dma.hbm_to_vmem [thread:$0]  %s320_s1, 256, %s28_s24, [#allocation6], %s246_s19, %s246_s19, %s247_s20  }
  0x23   :  { %239 = dma.done.wait [#allocation3], 256  }
  0x24   :  { %240 = vsyncadd [#allocation3], 4294967040 }
  0x25   :  { %241 = dma.done.wait [#allocation6], 256  }
  0x26   :  { %242 = vsyncadd [#allocation6], 4294967040  ;;  %v45_v0 = vld [vmem:[#allocation2] sm:$0xff]  ;;  %v289_v1 = vld [vmem:[#allocation2 + $0x8] sm:$0xff]  ;;  %s249_s1 = smov [#allocation7]  }
  0x27   :  { %v49_v2 = vand.u32 2147483647, %v45_v0  ;;  %v50_v3 = vand.u32 2147483647, %v289_v1  ;;  %vm93_vm0 = vcmp.ge.f32.partialorder %v45_v0, 0.0  ;;  %vm94_vm1 = vcmp.ge.f32.partialorder %v289_v1, 0.0 }
  0x28   :  { %v47_v21 = vld [vmem:[#allocation5] sm:$0xff]  ;;  %v48_v23 = vld [vmem:[#allocation5 + $0x8] sm:$0xff]  ;;  %v57_v36 = vmax.f32 %v45_v0, 0.0  ;;  %v58_v44 = vmax.f32 %v289_v1, 0.0  ;;  %s141_s6 = sshll.u32 %s249_s1, 4  ;;  %s142_s6 = int_to_ptr.vmem [resolvable:$true] %s141_s6 }
  0x29   :  { %v51_v4 = vsub.f32 0.0, %v49_v2  ;;  %v52_v5 = vsub.f32 0.0, %v50_v3  ;;  %v59_v37 = vmul.f32 %v47_v21, %v45_v0  ;;  %v60_v45 = vmul.f32 %v48_v23, %v289_v1  ;;  %s217_s7 = scalar_lea.vmem %s142_s6, 128  ;;  %p222_p3 = scmp.lt.s32.totalorder %s142_s6, %s142_s6 }
  0x2a   :  { %v107_v52 = vmul.f32 -0.5, %v47_v21  ;;  %v108_v55 = vmul.f32 -0.5, %v48_v23  ;;  %p218_p2 = scmp.ne.s32.totalorder %s142_s6, %s217_s7  ;;  %p223_p4 = scmp.lt.s32.totalorder %s217_s7, %s217_s7 }
  0x2b   :  { %v53_v6 = vmul.f32 1.442695, %v51_v4  ;;  %v55_v7 = vmul.f32 1.442695, %v52_v5  ;;  %v61_v46 = vsub.f32 %v57_v36, %v59_v37  ;;  %v62_v60 = vsub.f32 %v58_v44, %v60_v45 }
  0x2c   :  { %v109_v0 = vadd.f32 0.75, %v107_v52  ;;  %v110_v2 = vadd.f32 0.75, %v108_v55  ;;  %p224_p5 = por %p223_p4, %p222_p3 }
  0x2d   :  { %157 = vpow2.f32 %v53_v6 }
  0x2e   :  { %159 = vpow2.f32 %v55_v7  ;;  %p225_p6 = pnand %p224_p5, %p218_p2 }
  0x37   :  { %v158_v8 = vpop.eup %157 }
  0x38   :  { %v160_v9 = vpop.eup %159  ;;  %v63_v10 = vadd.f32 1.0, %v158_v8  ;;  %v95_v18 = vsel %vm93_vm0, 1.0, %v158_v8  ;;  %v66_v34 = vmul.f32 -0.5, %v158_v8  ;;  %v69_v40 = vand.u32 2147483647, %v158_v8 }
  0x39   :  { %v72_v11 = vadd.f32 1.0, %v160_v9  ;;  %v96_v20 = vsel %vm94_vm1, 1.0, %v160_v9  ;;  %v75_v35 = vmul.f32 -0.5, %v160_v9  ;;  %v78_v43 = vand.u32 2147483647, %v160_v9 }
  0x3a   :  { %161 = vrcp.f32 %v63_v10  ;;  %v67_v38 = vadd.f32 1.0, %v66_v34  ;;  %vm295_vm2 = vcmp.lt.f32.partialorder %v69_v40, 0.0004427343 }
  0x3b   :  { %163 = vrcp.f32 %v72_v11  ;;  %v76_v41 = vadd.f32 1.0, %v75_v35  ;;  %vm299_vm3 = vcmp.lt.f32.partialorder %v78_v43, 0.0004427343 }
  0x3c   :  { %165 = vlog2.f32 %v63_v10  ;;  %v68_v48 = vmul.f32 %v158_v8, %v67_v38 }
  0x3d   :  { %167 = vlog2.f32 %v72_v11  ;;  %v77_v51 = vmul.f32 %v160_v9, %v76_v41 }
  0x44   :  { %v162_v12 = vpop.eup %161 }
  0x45   :  { %v164_v13 = vpop.eup %163  ;;  %v87_v14 = vmul.f32 %v162_v12, %v63_v10 }
  0x46   :  { %v88_v15 = vmul.f32 %v164_v13, %v72_v11  ;;  %v166_v39 = vpop.eup %165 }
  0x47   :  { %v89_v16 = vsub.f32 2.0, %v87_v14  ;;  %v168_v42 = vpop.eup %167  ;;  %v65_v47 = vmul.f32 0.6931472, %v166_v39 }
  0x48   :  { %v90_v17 = vsub.f32 2.0, %v88_v15  ;;  %v74_v50 = vmul.f32 0.6931472, %v168_v42 }
  0x49   :  { %v91_v19 = vmul.f32 %v162_v12, %v89_v16  ;;  %v71_v61 = vsel %vm295_vm2, %v68_v48, %v65_v47 }
  0x4a   :  { %v92_v22 = vmul.f32 %v164_v13, %v90_v17  ;;  %v80_v63 = vsel %vm299_vm3, %v77_v51, %v74_v50  ;;  %v81_v5 = vadd.f32 %v71_v61, %v61_v46 }
  0x4b   :  { %v97_v24 = vmul.f32 %v95_v18, %v91_v19  ;;  %v82_v8 = vadd.f32 %v80_v63, %v62_v60 }
  0x4c   :  { %v98_v25 = vmul.f32 %v96_v20, %v92_v22 }
  0x4d   :  { %v99_v26 = vmul.f32 %v97_v24, %v47_v21 }
  0x4e   :  { %v100_v27 = vmul.f32 %v98_v25, %v48_v23 }
  0x4f   :  { %v101_v28 = vsub.f32 %v97_v24, %v99_v26  ;;  %v103_v29 = vsub.f32 %v47_v21, %v99_v26 }
  0x50   :  { %v102_v30 = vsub.f32 %v98_v25, %v100_v27  ;;  %v104_v31 = vsub.f32 %v48_v23, %v100_v27 }
  0x51   :  { %v105_v32 = vadd.f32 %v103_v29, %v101_v28 }
  0x52   :  { %v106_v33 = vadd.f32 %v104_v31, %v102_v30 }
  0x53   :  { %169 = vrsqrt.f32 %v105_v32  ;;  %vm113_vm4 = vcmp.eq.f32.partialorder %v105_v32, inf  ;;  %v116_v56 = vand.u32 2147483648, %v105_v32  ;;  %vm115_vm5 = vcmp.eq.f32.partialorder %v105_v32, 0.0 }
  0x54   :  { %171 = vrsqrt.f32 %v106_v33  ;;  %vm120_vm6 = vcmp.eq.f32.partialorder %v106_v33, inf  ;;  %v123_v59 = vand.u32 2147483648, %v106_v33  ;;  %vm122_vm7 = vcmp.eq.f32.partialorder %v106_v33, 0.0 }
  0x5d   :  { %v170_v53 = vpop.eup %169 }
  0x5e   :  { %v172_v57 = vpop.eup %171  ;;  %v112_v58 = vmul.f32 %v170_v53, %v105_v32 }
  0x5f   :  { %v119_v62 = vmul.f32 %v172_v57, %v106_v33 }
  0x60   :  { %v114_v1 = vsel %vm113_vm4, %v105_v32, %v112_v58 }
  0x61   :  { %v117_v3 = vsel %vm115_vm5, %v116_v56, %v114_v1  ;;  %v121_v4 = vsel %vm120_vm6, %v106_v33, %v119_v62 }
  0x62   :  { %v124_v6 = vsel %vm122_vm7, %v123_v59, %v121_v4  ;;  %v125_v7 = vmul.f32 %v117_v3, %v105_v32 }
  0x63   :  { %v126_v9 = vmul.f32 %v124_v6, %v106_v33 }
  0x64   :  { %v127_v10 = vmul.f32 %v125_v7, %v109_v0 }
  0x65   :  { %v128_v11 = vmul.f32 %v126_v9, %v110_v2 }
  0x66   :  { %v129_v12 = vmul.f32 %v127_v10, %v81_v5 }
  0x67   :  { %v130_v13 = vmul.f32 %v128_v11, %v82_v8 }
  0x69   :  { %v132_v14 = vadd.f32 %v130_v13, %v129_v12 }
  0x6b   :  { %134 = vst [vmem:[#allocation7] sm:$0xff] %v132_v14 }
  0x6c   :  { %228 = shalt.err (!%p225_p6)
}
  0x6d   :  { %s229_s10 = scalar_lea.hbm %s321_s2, 128 }
  0x6e   :  { %p230_p7 = scmp.ne.s32.totalorder %s321_s2, %s229_s10  ;;  %p233_p8 = scmp.lt.u32.totalorder %s229_s10, %s321_s2 }
  0x70   :  { %p235_p9 = pnand %p233_p8, %p230_p7 }
  0x72   :  { %238 = shalt.err (!%p235_p9)
}
  0x73   :  { %144 = dma.vmem_to_hbm [thread:$0]  %s142_s6, 128, %s321_s2, [#allocation4]  }
  0x74   :  { %243 = dma.done.wait [#allocation4], 128  }
  0x75   :  { %244 = vsyncadd [#allocation4], 4294967168 }
  0x76   :  { %148 = vsyncpa [#allocation3], 1 }
  0x77   :  { %149 = vsyncpa [#allocation6], 1 }
  0x78   :  { %150 = vsyncpa [#allocation4], 1 }

</bundles_post_ra>
